<compile_context>
chip_gen: v6e
topology: v6e:2x2x1
jax: 0.10.0
libtpu: 0.0.40
codegen_flags: <defaults>
</compile_context>

<pallas_src>
import functools

import jax
import jax.numpy as jnp
from jax.experimental import pallas as pl
from jax.experimental.pallas import tpu as pltpu


def _round_up(x: int, m: int) -> int:
    return (x + m - 1) // m * m


# ----------------------------------------------------------------------------
# Fused forward kernel: encoder (depth ReLU layers + linear to IR) followed by
# decoder (depth ReLU layers + linear back to number_features), all in VMEM.
# ----------------------------------------------------------------------------
def _fused_autoencoder_kernel(x_ref, *refs, depth: int, seg: int):
    n_layers = depth + 1
    enc_w = refs[0:n_layers]
    enc_b = refs[n_layers:2 * n_layers]
    dec_w = refs[2 * n_layers:3 * n_layers]
    dec_b = refs[3 * n_layers:4 * n_layers]
    o_ref = refs[4 * n_layers]
    act_ref = refs[4 * n_layers + 1]          # VMEM scratch: (b_tile, seg*(depth+1))

    def run_half(w_list, b_list, seg0):
        # seg0: (b_tile, seg) value for segment 0 (lane-padded with zeros).
        # Layer l reads segments 0..l (columns [:seg*(l+1)]) and writes its
        # ReLU output into segment l+1 — the "concat" is just a column write.
        act_ref[:, :seg] = seg0
        for l in range(depth):
            k = seg * (l + 1)
            y = jnp.dot(act_ref[:, :k], w_list[l][...],
                        preferred_element_type=jnp.float32) + b_list[l][...]
            act_ref[:, k:k + seg] = jnp.maximum(y, 0.0)
        kf = seg * (depth + 1)
        # Final (non-ReLU) projection of this half.
        return jnp.dot(act_ref[:, :kf], w_list[depth][...],
                       preferred_element_type=jnp.float32) + b_list[depth][...]

    # Zero the scratch once; padded weight rows/cols and biases are zero, so
    # every padded lane of every segment stays zero throughout.
    act_ref[...] = jnp.zeros_like(act_ref)

    ir = run_half(enc_w, enc_b, x_ref[...])    # (b_tile, seg), real IR in [:IR_size]
    out = run_half(dec_w, dec_b, ir)           # (b_tile, seg), real out in [:nf]
    o_ref[...] = out.astype(o_ref.dtype)


# ----------------------------------------------------------------------------
# Parameter construction (deterministic, mimics torch.nn.Linear default init:
# U(-1/sqrt(fan_in), 1/sqrt(fan_in)) for both weight and bias).
# Weights stored (in_features, out_features) so the layer is x @ W + b.
# ----------------------------------------------------------------------------
def _init_linear(key, in_features, out_features):
    kw, kb = jax.random.split(key)
    bound = 1.0 / jnp.sqrt(jnp.float32(in_features))
    w = jax.random.uniform(kw, (in_features, out_features), jnp.float32,
                           minval=-bound, maxval=bound)
    b = jax.random.uniform(kb, (out_features,), jnp.float32,
                           minval=-bound, maxval=bound)
    return w, b


def init_auto_encoder_params(key, number_features, layer_width, depth, IR_size):
    params = {"encode": [], "decode": []}
    prev_size = number_features
    for _ in range(depth):
        key, sub = jax.random.split(key)
        params["encode"].append(_init_linear(sub, prev_size, layer_width))
        prev_size += layer_width
    key, sub = jax.random.split(key)
    params["encode"].append(_init_linear(sub, prev_size, IR_size))

    prev_size = IR_size
    for _ in range(depth):
        key, sub = jax.random.split(key)
        params["decode"].append(_init_linear(sub, prev_size, layer_width))
        prev_size += layer_width
    key, sub = jax.random.split(key)
    params["decode"].append(_init_linear(sub, prev_size, number_features))
    return params


# ----------------------------------------------------------------------------
# Pack real (unpadded) parameters into the lane-dense segmented layout used by
# the fused kernel.  For a layer whose real input is the concatenation of
# segments with widths `seg_widths`, the real weight rows are scattered into
# 128-lane-aligned row blocks; all padding rows/cols/bias lanes are ZERO.
# ----------------------------------------------------------------------------
def _pad_params_segmented(params, number_features, layer_width, depth, IR_size, seg):
    def pad_layer(w, b, seg_widths):
        in_real, out_real = w.shape
        assert in_real == sum(seg_widths)
        assert out_real <= seg
        wp = jnp.zeros((seg * len(seg_widths), seg), jnp.float32)
        row = 0
        for s, width in enumerate(seg_widths):
            wp = wp.at[s * seg:s * seg + width, :out_real].set(w[row:row + width, :])
            row += width
        bp = jnp.zeros((1, seg), jnp.float32).at[0, :out_real].set(b)
        return wp, bp

    enc_w, enc_b, dec_w, dec_b = [], [], [], []
    for l in range(depth + 1):
        w, b = params["encode"][l]
        wp, bp = pad_layer(w, b, [number_features] + [layer_width] * l)
        enc_w.append(wp)
        enc_b.append(bp)
    for l in range(depth + 1):
        w, b = params["decode"][l]
        wp, bp = pad_layer(w, b, [IR_size] + [layer_width] * l)
        dec_w.append(wp)
        dec_b.append(bp)
    return enc_w, enc_b, dec_w, dec_b


# ----------------------------------------------------------------------------
# Forward pass (matches PyTorch forward semantics; dropout = identity / eval)
# ----------------------------------------------------------------------------
# TODO(synk): training-mode dropout (random masking + 1/(1-p) scaling) is not
#             applied; this forward corresponds to model.eval().
def auto_encoder_forward(params, x, *, number_features, layer_width, depth, IR_size):
    B, nf = x.shape
    assert nf == number_features

    # Lane-dense segment width (>= every feature dim, multiple of 128).
    seg = _round_up(max(number_features, layer_width, IR_size, 1), 128)
    # Batch padding / tiling (multiple of 8 sublanes; tile <= 512 rows).
    B_pad = _round_up(max(B, 8), 8)
    b_tile = min(B_pad, 512)
    B_pad = _round_up(B_pad, b_tile)

    enc_w, enc_b, dec_w, dec_b = _pad_params_segmented(
        params, number_features, layer_width, depth, IR_size, seg)
    param_inputs = list(enc_w) + list(enc_b) + list(dec_w) + list(dec_b)

    x_pad = jnp.zeros((B_pad, seg), jnp.float32).at[:B, :number_features].set(x)

    act_width = seg * (depth + 1)
    grid = (B_pad // b_tile,)

    kernel = functools.partial(_fused_autoencoder_kernel, depth=depth, seg=seg)

    in_specs = ([pl.BlockSpec((b_tile, seg), lambda i: (i, 0))] +
                [pl.BlockSpec(p.shape, lambda i: (0, 0)) for p in param_inputs])
    out_specs = pl.BlockSpec((b_tile, seg), lambda i: (i, 0))

    out_pad = pl.pallas_call(
        kernel,
        out_shape=jax.ShapeDtypeStruct((B_pad, seg), jnp.float32),
        grid_spec=pltpu.PrefetchScalarGridSpec(
            num_scalar_prefetch=0,
            grid=grid,
            in_specs=in_specs,
            out_specs=out_specs,
            scratch_shapes=[pltpu.VMEM((b_tile, act_width), jnp.float32)],
        ),
        compiler_params=pltpu.CompilerParams(
            dimension_semantics=("parallel",)),
    )(x_pad, *param_inputs)

    return out_pad[:B, :number_features]


# ----------------------------------------------------------------------------
# Pure-JAX reference for a correctness sanity check
# ----------------------------------------------------------------------------
def auto_encoder_forward_ref(params, x):
    encoded = x
    for (w, b) in params["encode"][:-1]:
        h = jnp.maximum(encoded @ w + b, 0.0)
        encoded = jnp.concatenate([encoded, h], axis=1)
    w, b = params["encode"][-1]
    encoded = encoded @ w + b
    decoded = encoded
    for (w, b) in params["decode"][:-1]:
        h = jnp.maximum(decoded @ w + b, 0.0)
        decoded = jnp.concatenate([decoded, h], axis=1)
    w, b = params["decode"][-1]
    return decoded @ w + b


if __name__ == "__main__":
    # Small, forward-consistent sizes.
    number_features = 16
    layer_width = 32
    depth = 2
    IR_size = 8
    dropout_rate = 0.0  # dropout is identity in this forward (eval semantics)
    batch = 8

    key = jax.random.PRNGKey(0)
    key_params, key_x = jax.random.split(key)
    params = init_auto_encoder_params(key_params, number_features,
                                      layer_width, depth, IR_size)
    x = jax.random.normal(key_x, (batch, number_features), jnp.float32)

    fwd = jax.jit(functools.partial(auto_encoder_forward,
                                    number_features=number_features,
                                    layer_width=layer_width,
                                    depth=depth,
                                    IR_size=IR_size))
    out = fwd(params, x)
    out = jax.block_until_ready(out)

    ref = auto_encoder_forward_ref(params, x)
    assert out.shape == (batch, number_features), out.shape
    assert jnp.allclose(out, ref, atol=1e-4, rtol=1e-4), "mismatch vs reference"

    print("KERNEL_OK")
</pallas_src>

<mosaic_0001>
module attributes {stable_mosaic.version = 11 : i64} {
  func.func @_fused_autoencoder_kernel(%arg0: i32, %arg1: memref<8x128xf32, #tpu.memory_space<vmem>>, %arg2: memref<128x128xf32, #tpu.memory_space<vmem>>, %arg3: memref<256x128xf32, #tpu.memory_space<vmem>>, %arg4: memref<384x128xf32, #tpu.memory_space<vmem>>, %arg5: memref<1x128xf32, #tpu.memory_space<vmem>>, %arg6: memref<1x128xf32, #tpu.memory_space<vmem>>, %arg7: memref<1x128xf32, #tpu.memory_space<vmem>>, %arg8: memref<128x128xf32, #tpu.memory_space<vmem>>, %arg9: memref<256x128xf32, #tpu.memory_space<vmem>>, %arg10: memref<384x128xf32, #tpu.memory_space<vmem>>, %arg11: memref<1x128xf32, #tpu.memory_space<vmem>>, %arg12: memref<1x128xf32, #tpu.memory_space<vmem>>, %arg13: memref<1x128xf32, #tpu.memory_space<vmem>>, %arg14: memref<8x128xf32, #tpu.memory_space<vmem>>, %arg15: memref<8x384xf32, #tpu.memory_space<vmem>>) attributes {dimension_semantics = [#tpu.dimension_semantics<parallel>], iteration_bounds = array<i64: 1>, scalar_prefetch = 0 : i64, scratch_operands = 1 : i64, tpu.core_type = #tpu.core_type<tc>, window_params = [{transform_indices = @transform_0, window_bounds = array<i64: 8, 128>}, {pipeline_mode = #tpu.pipeline_mode<synchronous>, transform_indices = @transform_1, window_bounds = array<i64: 128, 128>}, {pipeline_mode = #tpu.pipeline_mode<synchronous>, transform_indices = @transform_2, window_bounds = array<i64: 256, 128>}, {pipeline_mode = #tpu.pipeline_mode<synchronous>, transform_indices = @transform_3, window_bounds = array<i64: 384, 128>}, {pipeline_mode = #tpu.pipeline_mode<synchronous>, transform_indices = @transform_4, window_bounds = array<i64: 1, 128>}, {pipeline_mode = #tpu.pipeline_mode<synchronous>, transform_indices = @transform_5, window_bounds = array<i64: 1, 128>}, {pipeline_mode = #tpu.pipeline_mode<synchronous>, transform_indices = @transform_6, window_bounds = array<i64: 1, 128>}, {pipeline_mode = #tpu.pipeline_mode<synchronous>, transform_indices = @transform_7, window_bounds = array<i64: 128, 128>}, {pipeline_mode = #tpu.pipeline_mode<synchronous>, transform_indices = @transform_8, window_bounds = array<i64: 256, 128>}, {pipeline_mode = #tpu.pipeline_mode<synchronous>, transform_indices = @transform_9, window_bounds = array<i64: 384, 128>}, {pipeline_mode = #tpu.pipeline_mode<synchronous>, transform_indices = @transform_10, window_bounds = array<i64: 1, 128>}, {pipeline_mode = #tpu.pipeline_mode<synchronous>, transform_indices = @transform_11, window_bounds = array<i64: 1, 128>}, {pipeline_mode = #tpu.pipeline_mode<synchronous>, transform_indices = @transform_12, window_bounds = array<i64: 1, 128>}, {transform_indices = @transform_13, window_bounds = array<i64: 8, 128>}]} {
    %cst = arith.constant 0.000000e+00 : f32
    %0 = vector.broadcast %cst : f32 to vector<8x384xf32>
    %c0 = arith.constant 0 : index
    %c0_0 = arith.constant 0 : index
    %1 = vector.load %arg15[%c0, %c0_0] : memref<8x384xf32, #tpu.memory_space<vmem>>, vector<8x384xf32>
    tpu.vector_store %arg15[%c0, %c0_0], %0 {strides = array<i32>} : memref<8x384xf32, #tpu.memory_space<vmem>>, vector<8x384xf32>,
    %c0_1 = arith.constant 0 : index
    %c0_2 = arith.constant 0 : index
    %2 = vector.load %arg1[%c0_1, %c0_2] : memref<8x128xf32, #tpu.memory_space<vmem>>, vector<8x128xf32>
    %c0_3 = arith.constant 0 : index
    %c0_4 = arith.constant 0 : index
    %3 = vector.load %arg15[%c0_3, %c0_4] : memref<8x384xf32, #tpu.memory_space<vmem>>, vector<8x128xf32>
    tpu.vector_store %arg15[%c0_3, %c0_4], %2 {strides = array<i32>} : memref<8x384xf32, #tpu.memory_space<vmem>>, vector<8x128xf32>,
    %c0_5 = arith.constant 0 : index
    %c0_6 = arith.constant 0 : index
    %4 = vector.load %arg15[%c0_5, %c0_6] : memref<8x384xf32, #tpu.memory_space<vmem>>, vector<8x128xf32>
    %c0_7 = arith.constant 0 : index
    %c0_8 = arith.constant 0 : index
    %5 = vector.load %arg2[%c0_7, %c0_8] : memref<128x128xf32, #tpu.memory_space<vmem>>, vector<128x128xf32>
    %cst_9 = arith.constant dense<0.000000e+00> : vector<8x128xf32>
    %6 = tpu.matmul %4, %5, %cst_9 {dimension_numbers = #tpu.dot_dimension_numbers<[1], [0], [0], [1], [0, 0, 1, 1], [], []>} : vector<8x128xf32>, vector<128x128xf32>, vector<8x128xf32> -> vector<8x128xf32>
    %c0_10 = arith.constant 0 : index
    %c0_11 = arith.constant 0 : index
    %7 = vector.load %arg5[%c0_10, %c0_11] : memref<1x128xf32, #tpu.memory_space<vmem>>, vector<1x128xf32>
    %8 = vector.broadcast %7 : vector<1x128xf32> to vector<8x128xf32>
    %9 = arith.addf %6, %8 : vector<8x128xf32>
    %cst_12 = arith.constant 0.000000e+00 : f32
    %10 = vector.broadcast %cst_12 : f32 to vector<8x128xf32>
    %11 = arith.maximumf %9, %10 : vector<8x128xf32>
    %c0_13 = arith.constant 0 : index
    %c128 = arith.constant 128 : index
    %12 = vector.load %arg15[%c0_13, %c128] : memref<8x384xf32, #tpu.memory_space<vmem>>, vector<8x128xf32>
    tpu.vector_store %arg15[%c0_13, %c128], %11 {strides = array<i32>} : memref<8x384xf32, #tpu.memory_space<vmem>>, vector<8x128xf32>,
    %c0_14 = arith.constant 0 : index
    %c0_15 = arith.constant 0 : index
    %13 = vector.load %arg15[%c0_14, %c0_15] : memref<8x384xf32, #tpu.memory_space<vmem>>, vector<8x256xf32>
    %c0_16 = arith.constant 0 : index
    %c0_17 = arith.constant 0 : index
    %14 = vector.load %arg3[%c0_16, %c0_17] : memref<256x128xf32, #tpu.memory_space<vmem>>, vector<256x128xf32>
    %cst_18 = arith.constant dense<0.000000e+00> : vector<8x128xf32>
    %15 = tpu.matmul %13, %14, %cst_18 {dimension_numbers = #tpu.dot_dimension_numbers<[1], [0], [0], [1], [0, 0, 1, 1], [], []>} : vector<8x256xf32>, vector<256x128xf32>, vector<8x128xf32> -> vector<8x128xf32>
    %c0_19 = arith.constant 0 : index
    %c0_20 = arith.constant 0 : index
    %16 = vector.load %arg6[%c0_19, %c0_20] : memref<1x128xf32, #tpu.memory_space<vmem>>, vector<1x128xf32>
    %17 = vector.broadcast %16 : vector<1x128xf32> to vector<8x128xf32>
    %18 = arith.addf %15, %17 : vector<8x128xf32>
    %cst_21 = arith.constant 0.000000e+00 : f32
    %19 = vector.broadcast %cst_21 : f32 to vector<8x128xf32>
    %20 = arith.maximumf %18, %19 : vector<8x128xf32>
    %c0_22 = arith.constant 0 : index
    %c256 = arith.constant 256 : index
    %21 = vector.load %arg15[%c0_22, %c256] : memref<8x384xf32, #tpu.memory_space<vmem>>, vector<8x128xf32>
    tpu.vector_store %arg15[%c0_22, %c256], %20 {strides = array<i32>} : memref<8x384xf32, #tpu.memory_space<vmem>>, vector<8x128xf32>,
    %c0_23 = arith.constant 0 : index
    %c0_24 = arith.constant 0 : index
    %22 = vector.load %arg15[%c0_23, %c0_24] : memref<8x384xf32, #tpu.memory_space<vmem>>, vector<8x384xf32>
    %c0_25 = arith.constant 0 : index
    %c0_26 = arith.constant 0 : index
    %23 = vector.load %arg4[%c0_25, %c0_26] : memref<384x128xf32, #tpu.memory_space<vmem>>, vector<384x128xf32>
    %cst_27 = arith.constant dense<0.000000e+00> : vector<8x128xf32>
    %24 = tpu.matmul %22, %23, %cst_27 {dimension_numbers = #tpu.dot_dimension_numbers<[1], [0], [0], [1], [0, 0, 1, 1], [], []>} : vector<8x384xf32>, vector<384x128xf32>, vector<8x128xf32> -> vector<8x128xf32>
    %c0_28 = arith.constant 0 : index
    %c0_29 = arith.constant 0 : index
    %25 = vector.load %arg7[%c0_28, %c0_29] : memref<1x128xf32, #tpu.memory_space<vmem>>, vector<1x128xf32>
    %26 = vector.broadcast %25 : vector<1x128xf32> to vector<8x128xf32>
    %27 = arith.addf %24, %26 : vector<8x128xf32>
    %c0_30 = arith.constant 0 : index
    %c0_31 = arith.constant 0 : index
    %28 = vector.load %arg15[%c0_30, %c0_31] : memref<8x384xf32, #tpu.memory_space<vmem>>, vector<8x128xf32>
    tpu.vector_store %arg15[%c0_30, %c0_31], %27 {strides = array<i32>} : memref<8x384xf32, #tpu.memory_space<vmem>>, vector<8x128xf32>,
    %c0_32 = arith.constant 0 : index
    %c0_33 = arith.constant 0 : index
    %29 = vector.load %arg15[%c0_32, %c0_33] : memref<8x384xf32, #tpu.memory_space<vmem>>, vector<8x128xf32>
    %c0_34 = arith.constant 0 : index
    %c0_35 = arith.constant 0 : index
    %30 = vector.load %arg8[%c0_34, %c0_35] : memref<128x128xf32, #tpu.memory_space<vmem>>, vector<128x128xf32>
    %cst_36 = arith.constant dense<0.000000e+00> : vector<8x128xf32>
    %31 = tpu.matmul %29, %30, %cst_36 {dimension_numbers = #tpu.dot_dimension_numbers<[1], [0], [0], [1], [0, 0, 1, 1], [], []>} : vector<8x128xf32>, vector<128x128xf32>, vector<8x128xf32> -> vector<8x128xf32>
    %c0_37 = arith.constant 0 : index
    %c0_38 = arith.constant 0 : index
    %32 = vector.load %arg11[%c0_37, %c0_38] : memref<1x128xf32, #tpu.memory_space<vmem>>, vector<1x128xf32>
    %33 = vector.broadcast %32 : vector<1x128xf32> to vector<8x128xf32>
    %34 = arith.addf %31, %33 : vector<8x128xf32>
    %cst_39 = arith.constant 0.000000e+00 : f32
    %35 = vector.broadcast %cst_39 : f32 to vector<8x128xf32>
    %36 = arith.maximumf %34, %35 : vector<8x128xf32>
    %c0_40 = arith.constant 0 : index
    %c128_41 = arith.constant 128 : index
    %37 = vector.load %arg15[%c0_40, %c128_41] : memref<8x384xf32, #tpu.memory_space<vmem>>, vector<8x128xf32>
    tpu.vector_store %arg15[%c0_40, %c128_41], %36 {strides = array<i32>} : memref<8x384xf32, #tpu.memory_space<vmem>>, vector<8x128xf32>,
    %c0_42 = arith.constant 0 : index
    %c0_43 = arith.constant 0 : index
    %38 = vector.load %arg15[%c0_42, %c0_43] : memref<8x384xf32, #tpu.memory_space<vmem>>, vector<8x256xf32>
    %c0_44 = arith.constant 0 : index
    %c0_45 = arith.constant 0 : index
    %39 = vector.load %arg9[%c0_44, %c0_45] : memref<256x128xf32, #tpu.memory_space<vmem>>, vector<256x128xf32>
    %cst_46 = arith.constant dense<0.000000e+00> : vector<8x128xf32>
    %40 = tpu.matmul %38, %39, %cst_46 {dimension_numbers = #tpu.dot_dimension_numbers<[1], [0], [0], [1], [0, 0, 1, 1], [], []>} : vector<8x256xf32>, vector<256x128xf32>, vector<8x128xf32> -> vector<8x128xf32>
    %c0_47 = arith.constant 0 : index
    %c0_48 = arith.constant 0 : index
    %41 = vector.load %arg12[%c0_47, %c0_48] : memref<1x128xf32, #tpu.memory_space<vmem>>, vector<1x128xf32>
    %42 = vector.broadcast %41 : vector<1x128xf32> to vector<8x128xf32>
    %43 = arith.addf %40, %42 : vector<8x128xf32>
    %cst_49 = arith.constant 0.000000e+00 : f32
    %44 = vector.broadcast %cst_49 : f32 to vector<8x128xf32>
    %45 = arith.maximumf %43, %44 : vector<8x128xf32>
    %c0_50 = arith.constant 0 : index
    %c256_51 = arith.constant 256 : index
    %46 = vector.load %arg15[%c0_50, %c256_51] : memref<8x384xf32, #tpu.memory_space<vmem>>, vector<8x128xf32>
    tpu.vector_store %arg15[%c0_50, %c256_51], %45 {strides = array<i32>} : memref<8x384xf32, #tpu.memory_space<vmem>>, vector<8x128xf32>,
    %c0_52 = arith.constant 0 : index
    %c0_53 = arith.constant 0 : index
    %47 = vector.load %arg15[%c0_52, %c0_53] : memref<8x384xf32, #tpu.memory_space<vmem>>, vector<8x384xf32>
    %c0_54 = arith.constant 0 : index
    %c0_55 = arith.constant 0 : index
    %48 = vector.load %arg10[%c0_54, %c0_55] : memref<384x128xf32, #tpu.memory_space<vmem>>, vector<384x128xf32>
    %cst_56 = arith.constant dense<0.000000e+00> : vector<8x128xf32>
    %49 = tpu.matmul %47, %48, %cst_56 {dimension_numbers = #tpu.dot_dimension_numbers<[1], [0], [0], [1], [0, 0, 1, 1], [], []>} : vector<8x384xf32>, vector<384x128xf32>, vector<8x128xf32> -> vector<8x128xf32>
    %c0_57 = arith.constant 0 : index
    %c0_58 = arith.constant 0 : index
    %50 = vector.load %arg13[%c0_57, %c0_58] : memref<1x128xf32, #tpu.memory_space<vmem>>, vector<1x128xf32>
    %51 = vector.broadcast %50 : vector<1x128xf32> to vector<8x128xf32>
    %52 = arith.addf %49, %51 : vector<8x128xf32>
    %c0_59 = arith.constant 0 : index
    %c0_60 = arith.constant 0 : index
    %53 = vector.load %arg14[%c0_59, %c0_60] : memref<8x128xf32, #tpu.memory_space<vmem>>, vector<8x128xf32>
    tpu.vector_store %arg14[%c0_59, %c0_60], %52 {strides = array<i32>} : memref<8x128xf32, #tpu.memory_space<vmem>>, vector<8x128xf32>,
    return
  }
  func.func @transform_0(%arg0: i32) -> (i32, i32) {
    %c0_i32 = arith.constant 0 : i32
    %c0_i32_0 = arith.constant 0 : i32
    return %arg0, %c0_i32 : i32, i32
  }
  func.func @transform_1(%arg0: i32) -> (i32, i32) {
    %c0_i32 = arith.constant 0 : i32
    %c0_i32_0 = arith.constant 0 : i32
    %c0_i32_1 = arith.constant 0 : i32
    return %c0_i32, %c0_i32_0 : i32, i32
  }
  func.func @transform_2(%arg0: i32) -> (i32, i32) {
    %c0_i32 = arith.constant 0 : i32
    %c0_i32_0 = arith.constant 0 : i32
    %c0_i32_1 = arith.constant 0 : i32
    return %c0_i32, %c0_i32_0 : i32, i32
  }
  func.func @transform_3(%arg0: i32) -> (i32, i32) {
    %c0_i32 = arith.constant 0 : i32
    %c0_i32_0 = arith.constant 0 : i32
    %c0_i32_1 = arith.constant 0 : i32
    return %c0_i32, %c0_i32_0 : i32, i32
  }
  func.func @transform_4(%arg0: i32) -> (i32, i32) {
    %c0_i32 = arith.constant 0 : i32
    %c0_i32_0 = arith.constant 0 : i32
    %c0_i32_1 = arith.constant 0 : i32
    return %c0_i32, %c0_i32_0 : i32, i32
  }
  func.func @transform_5(%arg0: i32) -> (i32, i32) {
    %c0_i32 = arith.constant 0 : i32
    %c0_i32_0 = arith.constant 0 : i32
    %c0_i32_1 = arith.constant 0 : i32
    return %c0_i32, %c0_i32_0 : i32, i32
  }
  func.func @transform_6(%arg0: i32) -> (i32, i32) {
    %c0_i32 = arith.constant 0 : i32
    %c0_i32_0 = arith.constant 0 : i32
    %c0_i32_1 = arith.constant 0 : i32
    return %c0_i32, %c0_i32_0 : i32, i32
  }
  func.func @transform_7(%arg0: i32) -> (i32, i32) {
    %c0_i32 = arith.constant 0 : i32
    %c0_i32_0 = arith.constant 0 : i32
    %c0_i32_1 = arith.constant 0 : i32
    return %c0_i32, %c0_i32_0 : i32, i32
  }
  func.func @transform_8(%arg0: i32) -> (i32, i32) {
    %c0_i32 = arith.constant 0 : i32
    %c0_i32_0 = arith.constant 0 : i32
    %c0_i32_1 = arith.constant 0 : i32
    return %c0_i32, %c0_i32_0 : i32, i32
  }
  func.func @transform_9(%arg0: i32) -> (i32, i32) {
    %c0_i32 = arith.constant 0 : i32
    %c0_i32_0 = arith.constant 0 : i32
    %c0_i32_1 = arith.constant 0 : i32
    return %c0_i32, %c0_i32_0 : i32, i32
  }
  func.func @transform_10(%arg0: i32) -> (i32, i32) {
    %c0_i32 = arith.constant 0 : i32
    %c0_i32_0 = arith.constant 0 : i32
    %c0_i32_1 = arith.constant 0 : i32
    return %c0_i32, %c0_i32_0 : i32, i32
  }
  func.func @transform_11(%arg0: i32) -> (i32, i32) {
    %c0_i32 = arith.constant 0 : i32
    %c0_i32_0 = arith.constant 0 : i32
    %c0_i32_1 = arith.constant 0 : i32
    return %c0_i32, %c0_i32_0 : i32, i32
  }
  func.func @transform_12(%arg0: i32) -> (i32, i32) {
    %c0_i32 = arith.constant 0 : i32
    %c0_i32_0 = arith.constant 0 : i32
    %c0_i32_1 = arith.constant 0 : i32
    return %c0_i32, %c0_i32_0 : i32, i32
  }
  func.func @transform_13(%arg0: i32) -> (i32, i32) {
    %c0_i32 = arith.constant 0 : i32
    %c0_i32_0 = arith.constant 0 : i32
    return %arg0, %c0_i32 : i32, i32
  }
}

</mosaic_0001>

<bundles_post_ra>
// kernel: auto_encoder_forward.1
= control target key start
LH: loop header
LB: loop body
LE: loop exit
PB: predicated region body
PF: predicated region fallthrough
CT: control target
= control target key end

     0   :  { %v1259_v1 = vmov 0.0   ;;  %vm1260_vm0 = vmmov 0   ;;  %s2014_s0 = inlined_call_operand.vmem [shape: f32[8,128], index: 0, kind: input, shape index: {}]   ;;  %s2015_s1 = inlined_call_operand.vmem [shape: f32[128,128], index: 1, kind: input, shape index: {}]   ;;  %s2016_s2 = inlined_call_operand.vmem [shape: f32[256,128], index: 2, kind: input, shape index: {}]   ;;  %s2017_s3 = inlined_call_operand.vmem [shape: f32[384,128], index: 3, kind: input, shape index: {}]   ;;  %s2018_s4 = inlined_call_operand.vmem [shape: f32[1,128], index: 4, kind: input, shape index: {}]   ;;  %s2019_s5 = inlined_call_operand.vmem [shape: f32[1,128], index: 5, kind: input, shape index: {}]   ;;  %s2020_s6 = inlined_call_operand.vmem [shape: f32[1,128], index: 6, kind: input, shape index: {}]   ;;  %s2021_s7 = inlined_call_operand.vmem [shape: f32[128,128], index: 7, kind: input, shape index: {}]   ;;  %s2022_s8 = inlined_call_operand.vmem [shape: f32[256,128], index: 8, kind: input, shape index: {}]   ;;  %s2023_s9 = inlined_call_operand.vmem [shape: f32[384,128], index: 9, kind: input, shape index: {}]   ;;  %s2024_s10 = inlined_call_operand.vmem [shape: f32[1,128], index: 10, kind: input, shape index: {}]   ;;  %s2025_s11 = inlined_call_operand.vmem [shape: f32[1,128], index: 11, kind: input, shape index: {}]   ;;  %s2026_s12 = inlined_call_operand.vmem [shape: f32[1,128], index: 12, kind: input, shape index: {}]   ;;  %s2027_s13 = inlined_call_operand.hbm [shape: f32[8,128], index: 13, kind: output, shape index: {}]  }
   0x1   :  { %v66_v0 = vld [vmem:[%s2015_s1 + $0x78] sm:$0xff]  ;;  %1094 = vmatprep.subr.mxu0 %v1259_v1  ;;  %v65_v2 = vld [vmem:[%s2015_s1 + $0x70] sm:$0xff]  ;;  %1126 = vmatprep.mubr.msk.f32.mxu0 %vm1260_vm0, %v1259_v1  ;;  %v64_v3 = vld [vmem:[%s2015_s1 + $0x68] sm:$0xff] }
   0x2   :  { %1095 = vmatpush3.msra.mxu0 %v66_v0  ;;  %v63_v4 = vld [vmem:[%s2015_s1 + $0x60] sm:$0xff]  ;;  %v179_v5 = vld [vmem:[%s2016_s2 + $0xf8] sm:$0xff]  ;;  %v178_v7 = vld [vmem:[%s2016_s2 + $0xf0] sm:$0xff] }
   0x3   :  { %1096 = vmatprep.subr.mxu0 %v1259_v1  ;;  %903 = vmatprep.subr.mxu1 %v179_v5  ;;  %v163_v6 = vld [vmem:[%s2016_s2 + $0x78] sm:$0xff]  ;;  %v162_v8 = vld [vmem:[%s2016_s2 + $0x70] sm:$0xff]  ;;  %v177_v10 = vld [vmem:[%s2016_s2 + $0xe8] sm:$0xff] }
   0x4   :  { %1097 = vmatpush3.msra.mxu0 %v65_v2  ;;  %v62_v9 = vld [vmem:[%s2015_s1 + $0x58] sm:$0xff]  ;;  %904 = vmatpush3.msra.mxu1 %v163_v6  ;;  %v161_v11 = vld [vmem:[%s2016_s2 + $0x68] sm:$0xff]  ;;  %v61_v12 = vld [vmem:[%s2015_s1 + $0x50] sm:$0xff] }
   0x5   :  { %1098 = vmatprep.subr.mxu0 %v1259_v1  ;;  %905 = vmatprep.subr.mxu1 %v178_v7  ;;  %v176_v13 = vld [vmem:[%s2016_s2 + $0xe0] sm:$0xff]  ;;  %v60_v15 = vld [vmem:[%s2015_s1 + $0x48] sm:$0xff]  ;;  %v175_v16 = vld [vmem:[%s2016_s2 + $0xd8] sm:$0xff] }
   0x6   :  { %1099 = vmatpush3.msra.mxu0 %v64_v3  ;;  %906 = vmatpush3.msra.mxu1 %v162_v8  ;;  %v160_v14 = vld [vmem:[%s2016_s2 + $0x60] sm:$0xff]  ;;  %v159_v17 = vld [vmem:[%s2016_s2 + $0x58] sm:$0xff]  ;;  %v174_v19 = vld [vmem:[%s2016_s2 + $0xd0] sm:$0xff] }
   0x7   :  { %1100 = vmatprep.subr.mxu0 %v1259_v1  ;;  %907 = vmatprep.subr.mxu1 %v177_v10  ;;  %v59_v18 = vld [vmem:[%s2015_s1 + $0x40] sm:$0xff]  ;;  %v158_v20 = vld [vmem:[%s2016_s2 + $0x50] sm:$0xff] }
   0x8   :  { %1101 = vmatpush3.msra.mxu0 %v63_v4  ;;  %908 = vmatpush3.msra.mxu1 %v161_v11 }
   0x9   :  { %1102 = vmatprep.subr.mxu0 %v1259_v1  ;;  %909 = vmatprep.subr.mxu1 %v176_v13 }
   0xa   :  { %1103 = vmatpush3.msra.mxu0 %v62_v9  ;;  %910 = vmatpush3.msra.mxu1 %v160_v14 }
   0xb   :  { %1104 = vmatprep.subr.mxu0 %v1259_v1  ;;  %911 = vmatprep.subr.mxu1 %v175_v16 }
   0xc   :  { %1105 = vmatpush3.msra.mxu0 %v61_v12 }
   0xd   :  { %1106 = vmatprep.subr.mxu0 %v1259_v1 }
   0xe   :  { %1107 = vmatpush3.msra.mxu0 %v60_v15 }
   0xf   :  { %18 = vsyncpa [#allocation4], 0  ;;  %1108 = vmatprep.subr.mxu0 %v1259_v1  ;;  %v58_v21 = vld [vmem:[%s2015_s1 + $0x38] sm:$0xff]  ;;  %912 = vmatpush3.msra.mxu1 %v159_v17  ;;  %v173_v22 = vld [vmem:[%s2016_s2 + $0xc8] sm:$0xff]  ;;  %s1261_s18 = smov [#allocation3]  }
  0x10   :  { %1109 = vmatpush3.msra.mxu0 %v59_v18  ;;  %913 = vmatprep.subr.mxu1 %v174_v19  ;;  %v157_v23 = vld [vmem:[%s2016_s2 + $0x48] sm:$0xff]  ;;  %v57_v24 = vld [vmem:[%s2015_s1 + $0x30] sm:$0xff]  ;;  %v172_v25 = vld [vmem:[%s2016_s2 + $0xc0] sm:$0xff] }
  0x11   :  { %1110 = vmatprep.subr.mxu0 %v1259_v1  ;;  %914 = vmatpush3.msra.mxu1 %v158_v20  ;;  %v156_v26 = vld [vmem:[%s2016_s2 + $0x40] sm:$0xff]  ;;  %v56_v27 = vld [vmem:[%s2015_s1 + $0x28] sm:$0xff]  ;;  %v171_v28 = vld [vmem:[%s2016_s2 + $0xb8] sm:$0xff] }
  0x12   :  { %1111 = vmatpush3.msra.mxu0 %v58_v21  ;;  %915 = vmatprep.subr.mxu1 %v173_v22  ;;  %v155_v29 = vld [vmem:[%s2016_s2 + $0x38] sm:$0xff]  ;;  %v55_v30 = vld [vmem:[%s2015_s1 + $0x20] sm:$0xff]  ;;  %v170_v31 = vld [vmem:[%s2016_s2 + $0xb0] sm:$0xff] }
  0x13   :  { %1112 = vmatprep.subr.mxu0 %v1259_v1  ;;  %916 = vmatpush3.msra.mxu1 %v157_v23  ;;  %v154_v32 = vld [vmem:[%s2016_s2 + $0x30] sm:$0xff]  ;;  %v54_v33 = vld [vmem:[%s2015_s1 + $0x18] sm:$0xff]  ;;  %v169_v34 = vld [vmem:[%s2016_s2 + $0xa8] sm:$0xff] }
  0x14   :  { %1113 = vmatpush3.msra.mxu0 %v57_v24  ;;  %917 = vmatprep.subr.mxu1 %v172_v25  ;;  %v153_v35 = vld [vmem:[%s2016_s2 + $0x28] sm:$0xff]  ;;  %v53_v36 = vld [vmem:[%s2015_s1 + $0x10] sm:$0xff]  ;;  %v168_v37 = vld [vmem:[%s2016_s2 + $0xa0] sm:$0xff] }
  0x15   :  { %1114 = vmatprep.subr.mxu0 %v1259_v1  ;;  %918 = vmatpush3.msra.mxu1 %v156_v26  ;;  %v152_v38 = vld [vmem:[%s2016_s2 + $0x20] sm:$0xff]  ;;  %v52_v39 = vld [vmem:[%s2015_s1 + $0x8] sm:$0xff]  ;;  %v167_v40 = vld [vmem:[%s2016_s2 + $0x98] sm:$0xff] }
  0x16   :  { %1115 = vmatpush3.msra.mxu0 %v56_v27  ;;  %919 = vmatprep.subr.mxu1 %v171_v28  ;;  %v151_v41 = vld [vmem:[%s2016_s2 + $0x18] sm:$0xff]  ;;  %v51_v42 = vld [vmem:[%s2015_s1] sm:$0xff]  ;;  %v166_v44 = vld [vmem:[%s2016_s2 + $0x90] sm:$0xff] }
  0x17   :  { %1116 = vmatprep.subr.mxu0 %v1259_v1  ;;  %920 = vmatpush3.msra.mxu1 %v155_v29  ;;  %v1478_v43 = vld [vmem:[%s2014_s0] sm:$0xff]  ;;  %v150_v45 = vld [vmem:[%s2016_s2 + $0x10] sm:$0xff]  ;;  %v165_v46 = vld [vmem:[%s2016_s2 + $0x88] sm:$0xff] }
  0x18   :  { %1117 = vmatpush3.msra.mxu0 %v55_v30  ;;  %921 = vmatprep.subr.mxu1 %v170_v31  ;;  %v149_v47 = vld [vmem:[%s2016_s2 + $0x8] sm:$0xff]  ;;  %v164_v48 = vld [vmem:[%s2016_s2 + $0x80] sm:$0xff]  ;;  %v293_v50 = vld [vmem:[%s2017_s3 + $0xf8] sm:$0xff] }
  0x19   :  { %1118 = vmatprep.subr.mxu0 %v1259_v1  ;;  %922 = vmatpush3.msra.mxu1 %v154_v32  ;;  %v148_v49 = vld [vmem:[%s2016_s2] sm:$0xff]  ;;  %v277_v51 = vld [vmem:[%s2017_s3 + $0x78] sm:$0xff]  ;;  %v292_v52 = vld [vmem:[%s2017_s3 + $0xf0] sm:$0xff] }
  0x1a   :  { %1119 = vmatpush3.msra.mxu0 %v54_v33  ;;  %923 = vmatprep.subr.mxu1 %v169_v34  ;;  %v276_v53 = vld [vmem:[%s2017_s3 + $0x70] sm:$0xff]  ;;  %v291_v54 = vld [vmem:[%s2017_s3 + $0xe8] sm:$0xff]  ;;  %v290_v56 = vld [vmem:[%s2017_s3 + $0xe0] sm:$0xff] }
  0x1b   :  { %1120 = vmatprep.subr.mxu0 %v1259_v1  ;;  %924 = vmatpush3.msra.mxu1 %v153_v35  ;;  %v275_v55 = vld [vmem:[%s2017_s3 + $0x68] sm:$0xff]  ;;  %v274_v57 = vld [vmem:[%s2017_s3 + $0x60] sm:$0xff]  ;;  %v289_v58 = vld [vmem:[%s2017_s3 + $0xd8] sm:$0xff] }
  0x1c   :  { %1121 = vmatpush3.msra.mxu0 %v53_v36  ;;  %925 = vmatprep.subr.mxu1 %v168_v37  ;;  %v273_v59 = vld [vmem:[%s2017_s3 + $0x58] sm:$0xff]  ;;  %v288_v60 = vld [vmem:[%s2017_s3 + $0xd0] sm:$0xff]  ;;  %v287_v62 = vld [vmem:[%s2017_s3 + $0xc8] sm:$0xff] }
  0x1d   :  { %1122 = vmatprep.subr.mxu0 %v1259_v1  ;;  %926 = vmatpush3.msra.mxu1 %v152_v38  ;;  %v272_v61 = vld [vmem:[%s2017_s3 + $0x50] sm:$0xff]  ;;  %v271_v63 = vld [vmem:[%s2017_s3 + $0x48] sm:$0xff]  ;;  %v286_v0 = vld [vmem:[%s2017_s3 + $0xc0] sm:$0xff] }
  0x1e   :  { %1123 = vmatpush3.msra.mxu0 %v52_v39  ;;  %927 = vmatprep.subr.mxu1 %v167_v40  ;;  %v270_v2 = vld [vmem:[%s2017_s3 + $0x40] sm:$0xff]  ;;  %v285_v3 = vld [vmem:[%s2017_s3 + $0xb8] sm:$0xff]  ;;  %v284_v5 = vld [vmem:[%s2017_s3 + $0xb0] sm:$0xff] }
  0x1f   :  { %1124 = vmatprep.subr.mxu0 %v1259_v1  ;;  %928 = vmatpush3.msra.mxu1 %v151_v41  ;;  %v269_v4 = vld [vmem:[%s2017_s3 + $0x38] sm:$0xff]  ;;  %v268_v6 = vld [vmem:[%s2017_s3 + $0x30] sm:$0xff]  ;;  %v283_v7 = vld [vmem:[%s2017_s3 + $0xa8] sm:$0xff] }
  0x20   :  { %1125 = vmatpush3.msra.mxu0 %v51_v42  ;;  %929 = vmatprep.subr.mxu1 %v166_v44  ;;  %v267_v8 = vld [vmem:[%s2017_s3 + $0x28] sm:$0xff]  ;;  %v282_v9 = vld [vmem:[%s2017_s3 + $0xa0] sm:$0xff]  ;;  %v281_v11 = vld [vmem:[%s2017_s3 + $0x98] sm:$0xff] }
  0x21   :  { %1127 = vmatmul.mubr.f32.vlgmr.msra.gmra.mxu0 %v1478_v43  ;;  %930 = vmatpush3.msra.mxu1 %v150_v45  ;;  %v266_v10 = vld [vmem:[%s2017_s3 + $0x20] sm:$0xff]  ;;  %v265_v12 = vld [vmem:[%s2017_s3 + $0x18] sm:$0xff]  ;;  %v280_v13 = vld [vmem:[%s2017_s3 + $0x90] sm:$0xff] }
  0x22   :  { %931 = vmatprep.subr.mxu1 %v165_v46  ;;  %938 = vmatprep.subr.mxu0 %v293_v50  ;;  %v264_v14 = vld [vmem:[%s2017_s3 + $0x10] sm:$0xff]  ;;  %v279_v15 = vld [vmem:[%s2017_s3 + $0x88] sm:$0xff]  ;;  %v278_v17 = vld [vmem:[%s2017_s3 + $0x80] sm:$0xff] }
  0x23   :  { %932 = vmatpush3.msra.mxu1 %v149_v47  ;;  %939 = vmatpush3.msra.mxu0 %v277_v51  ;;  %v263_v16 = vld [vmem:[%s2017_s3 + $0x8] sm:$0xff]  ;;  %v880_v18 = vld [vmem:[%s2018_s4] ss:$0 sm:$0xff]  ;;  %v309_v23 = vld [vmem:[%s2017_s3 + $0x178] sm:$0xff] }
  0x24   :  { %933 = vmatprep.subr.mxu1 %v164_v48  ;;  %940 = vmatprep.subr.mxu0 %v292_v52  ;;  %v308_v24 = vld [vmem:[%s2017_s3 + $0x170] sm:$0xff]  ;;  %v307_v25 = vld [vmem:[%s2017_s3 + $0x168] sm:$0xff]  ;;  %v306_v26 = vld [vmem:[%s2017_s3 + $0x160] sm:$0xff] }
  0x25   :  { %934 = vmatpush3.msra.mxu1 %v148_v49  ;;  %941 = vmatpush3.msra.mxu0 %v276_v53  ;;  %v305_v27 = vld [vmem:[%s2017_s3 + $0x158] sm:$0xff]  ;;  %v304_v28 = vld [vmem:[%s2017_s3 + $0x150] sm:$0xff]  ;;  %v303_v29 = vld [vmem:[%s2017_s3 + $0x148] sm:$0xff] }
  0x26   :  { %1129 = vmatprep.subr.mxu1 %v1259_v1  ;;  %942 = vmatprep.subr.mxu0 %v291_v54  ;;  %v302_v30 = vld [vmem:[%s2017_s3 + $0x140] sm:$0xff]  ;;  %v301_v31 = vld [vmem:[%s2017_s3 + $0x138] sm:$0xff]  ;;  %v300_v32 = vld [vmem:[%s2017_s3 + $0x130] sm:$0xff] }
  0x27   :  { %943 = vmatpush3.msra.mxu0 %v275_v55  ;;  %v299_v33 = vld [vmem:[%s2017_s3 + $0x128] sm:$0xff]  ;;  %v262_v34 = vld [vmem:[%s2017_s3] sm:$0xff]  ;;  %v297_v36 = vld [vmem:[%s2017_s3 + $0x118] sm:$0xff] }
  0x28   :  { %944 = vmatprep.subr.mxu0 %v290_v56  ;;  %v298_v35 = vld [vmem:[%s2017_s3 + $0x120] sm:$0xff]  ;;  %v296_v37 = vld [vmem:[%s2017_s3 + $0x110] sm:$0xff]  ;;  %v295_v38 = vld [vmem:[%s2017_s3 + $0x108] sm:$0xff] }
  0x29   :  { %945 = vmatpush3.msra.mxu0 %v274_v57  ;;  %v294_v39 = vld [vmem:[%s2017_s3 + $0x100] sm:$0xff]  ;;  %v474_v40 = vld [vmem:[%s2021_s7 + $0x78] sm:$0xff]  ;;  %v473_v41 = vld [vmem:[%s2021_s7 + $0x70] sm:$0xff] }
  0x2a   :  { %946 = vmatprep.subr.mxu0 %v289_v58  ;;  %v472_v42 = vld [vmem:[%s2021_s7 + $0x68] sm:$0xff]  ;;  %v470_v44 = vld [vmem:[%s2021_s7 + $0x58] sm:$0xff]  ;;  %v469_v45 = vld [vmem:[%s2021_s7 + $0x50] sm:$0xff] }
  0x2b   :  { %947 = vmatpush3.msra.mxu0 %v273_v59  ;;  %v468_v46 = vld [vmem:[%s2021_s7 + $0x48] sm:$0xff]  ;;  %v467_v47 = vld [vmem:[%s2021_s7 + $0x40] sm:$0xff]  ;;  %v466_v48 = vld [vmem:[%s2021_s7 + $0x38] sm:$0xff] }
  0x2c   :  { %948 = vmatprep.subr.mxu0 %v288_v60  ;;  %v465_v49 = vld [vmem:[%s2021_s7 + $0x30] sm:$0xff]  ;;  %v464_v50 = vld [vmem:[%s2021_s7 + $0x28] sm:$0xff]  ;;  %v463_v51 = vld [vmem:[%s2021_s7 + $0x20] sm:$0xff] }
  0x2d   :  { %949 = vmatpush3.msra.mxu0 %v272_v61  ;;  %v462_v52 = vld [vmem:[%s2021_s7 + $0x18] sm:$0xff]  ;;  %v461_v53 = vld [vmem:[%s2021_s7 + $0x10] sm:$0xff]  ;;  %v881_v55 = vld [vmem:[%s2019_s5] ss:$0 sm:$0xff] }
  0x2e   :  { %950 = vmatprep.subr.mxu0 %v287_v62  ;;  %v460_v60 = vld [vmem:[%s2021_s7 + $0x8] sm:$0xff]  ;;  %v459_v61 = vld [vmem:[%s2021_s7] sm:$0xff]  ;;  %v587_v62 = vld [vmem:[%s2022_s8 + $0xf8] sm:$0xff] }
  0x2f   :  { %951 = vmatpush3.msra.mxu0 %v271_v63  ;;  %v701_v63 = vld [vmem:[%s2023_s9 + $0xf8] sm:$0xff] }
  0x30   :  { %952 = vmatprep.subr.mxu0 %v286_v0  ;;  %v571_v0 = vld [vmem:[%s2022_s8 + $0x78] sm:$0xff] }
  0x31   :  { %953 = vmatpush3.msra.mxu0 %v270_v2  ;;  %v586_v2 = vld [vmem:[%s2022_s8 + $0xf0] sm:$0xff] }
  0x32   :  { %954 = vmatprep.subr.mxu0 %v285_v3  ;;  %v570_v3 = vld [vmem:[%s2022_s8 + $0x70] sm:$0xff] }
  0x33   :  { %955 = vmatpush3.msra.mxu0 %v269_v4  ;;  %v585_v4 = vld [vmem:[%s2022_s8 + $0xe8] sm:$0xff] }
  0x34   :  { %956 = vmatprep.subr.mxu0 %v284_v5  ;;  %v569_v5 = vld [vmem:[%s2022_s8 + $0x68] sm:$0xff] }
  0x35   :  { %957 = vmatpush3.msra.mxu0 %v268_v6  ;;  %v584_v6 = vld [vmem:[%s2022_s8 + $0xe0] sm:$0xff] }
  0x36   :  { %958 = vmatprep.subr.mxu0 %v283_v7  ;;  %v568_v7 = vld [vmem:[%s2022_s8 + $0x60] sm:$0xff] }
  0x37   :  { %959 = vmatpush3.msra.mxu0 %v267_v8  ;;  %v583_v8 = vld [vmem:[%s2022_s8 + $0xd8] sm:$0xff] }
  0x38   :  { %960 = vmatprep.subr.mxu0 %v282_v9  ;;  %v567_v9 = vld [vmem:[%s2022_s8 + $0x58] sm:$0xff] }
  0x39   :  { %961 = vmatpush3.msra.mxu0 %v266_v10  ;;  %v582_v10 = vld [vmem:[%s2022_s8 + $0xd0] sm:$0xff] }
  0x3a   :  { %962 = vmatprep.subr.mxu0 %v281_v11  ;;  %v566_v11 = vld [vmem:[%s2022_s8 + $0x50] sm:$0xff] }
  0x3b   :  { %963 = vmatpush3.msra.mxu0 %v265_v12  ;;  %v581_v12 = vld [vmem:[%s2022_s8 + $0xc8] sm:$0xff] }
  0x3c   :  { %964 = vmatprep.subr.mxu0 %v280_v13  ;;  %v565_v13 = vld [vmem:[%s2022_s8 + $0x48] sm:$0xff] }
  0x3d   :  { %965 = vmatpush3.msra.mxu0 %v264_v14  ;;  %v580_v14 = vld [vmem:[%s2022_s8 + $0xc0] sm:$0xff] }
  0x3e   :  { %966 = vmatprep.subr.mxu0 %v279_v15  ;;  %v564_v15 = vld [vmem:[%s2022_s8 + $0x40] sm:$0xff] }
  0x3f   :  { %967 = vmatpush3.msra.mxu0 %v263_v16  ;;  %v579_v16 = vld [vmem:[%s2022_s8 + $0xb8] sm:$0xff] }
  0x40   :  { %968 = vmatprep.subr.mxu0 %v278_v17  ;;  %v563_v17 = vld [vmem:[%s2022_s8 + $0x38] sm:$0xff] }
  0x41   :  { %969 = vmatpush3.msra.mxu0 %v262_v34 }
  0x42   :  { %1164 = vmatprep.subr.mxu0 %v1259_v1 }
  0xe1   :  { %v140_v19 = vpop.f32.mrf.mxu0 }
  0xe2   :  { %v141_v20 = vadd.f32 %v880_v18, %v140_v19  ;;  %v578_v18 = vld [vmem:[%s2022_s8 + $0xb0] sm:$0xff] }
  0xe3   :  { %v1128_v21 = vpop.f32.mrf.mxu0  ;;  %v562_v19 = vld [vmem:[%s2022_s8 + $0x30] sm:$0xff] }
  0xe4   :  { %v144_v22 = vmax.f32 %v141_v20, 0.0  ;;  %v577_v20 = vld [vmem:[%s2022_s8 + $0xa8] sm:$0xff] }
  0xe5   :  { %v561_v21 = vld [vmem:[%s2022_s8 + $0x28] sm:$0xff] }
  0xe6   :  { %251 = vmatprep.mubr.f32.mxu1 %v144_v22  ;;  %381 = vmatprep.mubr.f32.mxu0 %v144_v22  ;;  %v576_v22 = vld [vmem:[%s2022_s8 + $0xa0] sm:$0xff] }
  0xe7   :  { %252 = vmatmul.mubr.f32.vlgmr.msra.gmra.mxu1 %v1478_v43  ;;  %382 = vmatmul.mubr.f32.vlgmr.msra.gmra.mxu0 %v1478_v43  ;;  %v471_v43 = vld [vmem:[%s2021_s7 + $0x60] sm:$0xff] }
  0xe8   :  { %1130 = vmatpush3.msra.mxu1 %v309_v23  ;;  %1161 = vmatprep.mubr.msk.f32.mxu1 %vm1260_vm0, %v1259_v1  ;;  %v560_v23 = vld [vmem:[%s2022_s8 + $0x20] sm:$0xff] }
  0xe9   :  { %1131 = vmatprep.subr.mxu1 %v1259_v1  ;;  %1196 = vmatprep.mubr.msk.f32.mxu0 %vm1260_vm0, %v1259_v1 }
  0xea   :  { %1132 = vmatpush3.msra.mxu1 %v308_v24  ;;  %1165 = vmatpush3.msra.mxu0 %v474_v40  ;;  %v575_v24 = vld [vmem:[%s2022_s8 + $0x98] sm:$0xff]  ;;  %v682_v40 = vld [vmem:[%s2023_s9 + $0x60] sm:$0xff] }
  0xeb   :  { %1133 = vmatprep.subr.mxu1 %v1259_v1  ;;  %1166 = vmatprep.subr.mxu0 %v1259_v1 }
  0xec   :  { %1134 = vmatpush3.msra.mxu1 %v307_v25  ;;  %1167 = vmatpush3.msra.mxu0 %v473_v41  ;;  %v559_v25 = vld [vmem:[%s2022_s8 + $0x18] sm:$0xff] }
  0xed   :  { %1135 = vmatprep.subr.mxu1 %v1259_v1  ;;  %1168 = vmatprep.subr.mxu0 %v1259_v1  ;;  %v697_v41 = vld [vmem:[%s2023_s9 + $0xd8] sm:$0xff] }
  0xee   :  { %1136 = vmatpush3.msra.mxu1 %v306_v26  ;;  %1169 = vmatpush3.msra.mxu0 %v472_v42  ;;  %v681_v42 = vld [vmem:[%s2023_s9 + $0x58] sm:$0xff] }
  0xef   :  { %1137 = vmatprep.subr.mxu1 %v1259_v1  ;;  %1170 = vmatprep.subr.mxu0 %v1259_v1 }
  0xf0   :  { %1138 = vmatpush3.msra.mxu1 %v305_v27  ;;  %1171 = vmatpush3.msra.mxu0 %v471_v43  ;;  %v696_v43 = vld [vmem:[%s2023_s9 + $0xd0] sm:$0xff] }
  0xf1   :  { %1139 = vmatprep.subr.mxu1 %v1259_v1  ;;  %1172 = vmatprep.subr.mxu0 %v1259_v1 }
  0xf2   :  { %1140 = vmatpush3.msra.mxu1 %v304_v28  ;;  %1173 = vmatpush3.msra.mxu0 %v470_v44  ;;  %v680_v44 = vld [vmem:[%s2023_s9 + $0x50] sm:$0xff] }
  0xf3   :  { %1141 = vmatprep.subr.mxu1 %v1259_v1  ;;  %1174 = vmatprep.subr.mxu0 %v1259_v1 }
  0xf4   :  { %1142 = vmatpush3.msra.mxu1 %v303_v29  ;;  %1175 = vmatpush3.msra.mxu0 %v469_v45  ;;  %v882_v29 = vld [vmem:[%s2020_s6] ss:$0 sm:$0xff]  ;;  %v695_v45 = vld [vmem:[%s2023_s9 + $0xc8] sm:$0xff] }
  0xf5   :  { %1143 = vmatprep.subr.mxu1 %v1259_v1  ;;  %1176 = vmatprep.subr.mxu0 %v1259_v1 }
  0xf6   :  { %1144 = vmatpush3.msra.mxu1 %v302_v30  ;;  %1177 = vmatpush3.msra.mxu0 %v468_v46  ;;  %v679_v46 = vld [vmem:[%s2023_s9 + $0x48] sm:$0xff] }
  0xf7   :  { %1145 = vmatprep.subr.mxu1 %v1259_v1  ;;  %1178 = vmatprep.subr.mxu0 %v1259_v1 }
  0xf8   :  { %1146 = vmatpush3.msra.mxu1 %v301_v31  ;;  %1179 = vmatpush3.msra.mxu0 %v467_v47  ;;  %v694_v47 = vld [vmem:[%s2023_s9 + $0xc0] sm:$0xff] }
  0xf9   :  { %1147 = vmatprep.subr.mxu1 %v1259_v1  ;;  %1180 = vmatprep.subr.mxu0 %v1259_v1 }
  0xfa   :  { %1148 = vmatpush3.msra.mxu1 %v300_v32  ;;  %1181 = vmatpush3.msra.mxu0 %v466_v48  ;;  %v678_v48 = vld [vmem:[%s2023_s9 + $0x40] sm:$0xff] }
  0xfb   :  { %1149 = vmatprep.subr.mxu1 %v1259_v1  ;;  %1182 = vmatprep.subr.mxu0 %v1259_v1 }
  0xfc   :  { %1150 = vmatpush3.msra.mxu1 %v299_v33  ;;  %1183 = vmatpush3.msra.mxu0 %v465_v49  ;;  %v685_v33 = vld [vmem:[%s2023_s9 + $0x78] sm:$0xff] }
  0xfd   :  { %1151 = vmatprep.subr.mxu1 %v1259_v1  ;;  %1184 = vmatprep.subr.mxu0 %v1259_v1  ;;  %v693_v49 = vld [vmem:[%s2023_s9 + $0xb8] sm:$0xff] }
  0xfe   :  { %1152 = vmatpush3.msra.mxu1 %v298_v35  ;;  %1185 = vmatpush3.msra.mxu0 %v464_v50  ;;  %v700_v35 = vld [vmem:[%s2023_s9 + $0xf0] sm:$0xff]  ;;  %v677_v50 = vld [vmem:[%s2023_s9 + $0x38] sm:$0xff] }
  0xff   :  { %1153 = vmatprep.subr.mxu1 %v1259_v1  ;;  %1186 = vmatprep.subr.mxu0 %v1259_v1 }
 0x100   :  { %1154 = vmatpush3.msra.mxu1 %v297_v36  ;;  %1187 = vmatpush3.msra.mxu0 %v463_v51  ;;  %v684_v36 = vld [vmem:[%s2023_s9 + $0x70] sm:$0xff] }
 0x101   :  { %1155 = vmatprep.subr.mxu1 %v1259_v1  ;;  %1188 = vmatprep.subr.mxu0 %v1259_v1  ;;  %v692_v51 = vld [vmem:[%s2023_s9 + $0xb0] sm:$0xff] }
 0x102   :  { %1156 = vmatpush3.msra.mxu1 %v296_v37  ;;  %1189 = vmatpush3.msra.mxu0 %v462_v52  ;;  %v699_v37 = vld [vmem:[%s2023_s9 + $0xe8] sm:$0xff]  ;;  %v676_v52 = vld [vmem:[%s2023_s9 + $0x30] sm:$0xff] }
 0x103   :  { %1157 = vmatprep.subr.mxu1 %v1259_v1  ;;  %1190 = vmatprep.subr.mxu0 %v1259_v1 }
 0x104   :  { %1158 = vmatpush3.msra.mxu1 %v295_v38  ;;  %1191 = vmatpush3.msra.mxu0 %v461_v53  ;;  %v683_v38 = vld [vmem:[%s2023_s9 + $0x68] sm:$0xff] }
 0x105   :  { %1159 = vmatprep.subr.mxu1 %v1259_v1  ;;  %1192 = vmatprep.subr.mxu0 %v1259_v1  ;;  %v691_v53 = vld [vmem:[%s2023_s9 + $0xa8] sm:$0xff] }
 0x106   :  { %1160 = vmatpush3.msra.mxu1 %v294_v39  ;;  %1193 = vmatpush3.msra.mxu0 %v460_v60  ;;  %v698_v39 = vld [vmem:[%s2023_s9 + $0xe0] sm:$0xff]  ;;  %v688_v60 = vld [vmem:[%s2023_s9 + $0x90] sm:$0xff] }
 0x107   :  { %1194 = vmatprep.subr.mxu0 %v1259_v1  ;;  %1007 = vmatprep.subr.mxu1 %v587_v62  ;;  %v672_v62 = vld [vmem:[%s2023_s9 + $0x10] sm:$0xff] }
 0x108   :  { %1195 = vmatpush3.msra.mxu0 %v459_v61  ;;  %v558_v61 = vld [vmem:[%s2022_s8 + $0x10] sm:$0xff] }
 0x109   :  { %1042 = vmatprep.subr.mxu0 %v701_v63  ;;  %v573_v63 = vld [vmem:[%s2022_s8 + $0x88] sm:$0xff] }
 0x1a7   :  { %v935_v54 = vpop.f32.mrf.mxu1  ;;  %v970_v26 = vpop.f32.mrf.mxu0 }
 0x1a9   :  { %v936_v56 = vpop.f32.mrf.mxu1  ;;  %v971_v27 = vpop.f32.mrf.mxu0 }
 0x1aa   :  { %v937_v57 = vadd.f32 %v936_v56, %v935_v54  ;;  %v972_v28 = vadd.f32 %v971_v27, %v970_v26  ;;  %v675_v54 = vld [vmem:[%s2023_s9 + $0x28] sm:$0xff]  ;;  %v674_v56 = vld [vmem:[%s2023_s9 + $0x20] sm:$0xff]  ;;  %v704_v26 = vld [vmem:[%s2023_s9 + $0x110] sm:$0xff] }
 0x1ab   :  { %v703_v27 = vld [vmem:[%s2023_s9 + $0x108] sm:$0xff] }
 0x1ac   :  { %v254_v58 = vadd.f32 %v937_v57, %v881_v55  ;;  %v384_v30 = vadd.f32 %v972_v28, %v882_v29  ;;  %v690_v55 = vld [vmem:[%s2023_s9 + $0xa0] sm:$0xff]  ;;  %v689_v57 = vld [vmem:[%s2023_s9 + $0x98] sm:$0xff] }
 0x1ad   :  { %v702_v28 = vld [vmem:[%s2023_s9 + $0x100] sm:$0xff] }
 0x1ae   :  { %v257_v59 = vmax.f32 %v254_v58, 0.0  ;;  %v673_v58 = vld [vmem:[%s2023_s9 + $0x18] sm:$0xff] }
 0x1b0   :  { %1162 = vmatmul.mubr.f32.vlgmr.msra.gmra.mxu1 %v257_v59  ;;  %v574_v59 = vld [vmem:[%s2022_s8 + $0x90] sm:$0xff] }
 0x1b1   :  { %1008 = vmatpush3.msra.mxu1 %v571_v0  ;;  %v687_v0 = vld [vmem:[%s2023_s9 + $0x88] sm:$0xff] }
 0x1b2   :  { %1009 = vmatprep.subr.mxu1 %v586_v2  ;;  %v557_v2 = vld [vmem:[%s2022_s8 + $0x8] sm:$0xff] }
 0x1b3   :  { %1010 = vmatpush3.msra.mxu1 %v570_v3  ;;  %v671_v3 = vld [vmem:[%s2023_s9 + $0x8] sm:$0xff] }
 0x1b4   :  { %1011 = vmatprep.subr.mxu1 %v585_v4  ;;  %v572_v4 = vld [vmem:[%s2022_s8 + $0x80] sm:$0xff] }
 0x1b5   :  { %1012 = vmatpush3.msra.mxu1 %v569_v5  ;;  %v686_v5 = vld [vmem:[%s2023_s9 + $0x80] sm:$0xff] }
 0x1b6   :  { %1013 = vmatprep.subr.mxu1 %v584_v6  ;;  %v556_v6 = vld [vmem:[%s2022_s8] sm:$0xff] }
 0x1b7   :  { %1014 = vmatpush3.msra.mxu1 %v568_v7  ;;  %v670_v7 = vld [vmem:[%s2023_s9] sm:$0xff] }
 0x1b8   :  { %1015 = vmatprep.subr.mxu1 %v583_v8  ;;  %v883_v8 = vld [vmem:[%s2024_s10] ss:$0 sm:$0xff] }
 0x1b9   :  { %1016 = vmatpush3.msra.mxu1 %v567_v9 }
 0x1ba   :  { %1017 = vmatprep.subr.mxu1 %v582_v10 }
 0x1bb   :  { %1018 = vmatpush3.msra.mxu1 %v566_v11 }
 0x1bc   :  { %1019 = vmatprep.subr.mxu1 %v581_v12 }
 0x1bd   :  { %1020 = vmatpush3.msra.mxu1 %v565_v13  ;;  %v717_v13 = vld [vmem:[%s2023_s9 + $0x178] sm:$0xff] }
 0x1be   :  { %1021 = vmatprep.subr.mxu1 %v580_v14  ;;  %v716_v14 = vld [vmem:[%s2023_s9 + $0x170] sm:$0xff] }
 0x1bf   :  { %1022 = vmatpush3.msra.mxu1 %v564_v15  ;;  %v715_v15 = vld [vmem:[%s2023_s9 + $0x168] sm:$0xff] }
 0x1c0   :  { %1023 = vmatprep.subr.mxu1 %v579_v16  ;;  %v714_v16 = vld [vmem:[%s2023_s9 + $0x160] sm:$0xff] }
 0x1c1   :  { %1024 = vmatpush3.msra.mxu1 %v563_v17  ;;  %v713_v17 = vld [vmem:[%s2023_s9 + $0x158] sm:$0xff] }
 0x1c2   :  { %1025 = vmatprep.subr.mxu1 %v578_v18  ;;  %v712_v18 = vld [vmem:[%s2023_s9 + $0x150] sm:$0xff] }
 0x1c3   :  { %1026 = vmatpush3.msra.mxu1 %v562_v19  ;;  %v711_v19 = vld [vmem:[%s2023_s9 + $0x148] sm:$0xff] }
 0x1c4   :  { %1027 = vmatprep.subr.mxu1 %v577_v20  ;;  %v710_v20 = vld [vmem:[%s2023_s9 + $0x140] sm:$0xff] }
 0x1c5   :  { %1028 = vmatpush3.msra.mxu1 %v561_v21  ;;  %v709_v21 = vld [vmem:[%s2023_s9 + $0x138] sm:$0xff] }
 0x1c6   :  { %1029 = vmatprep.subr.mxu1 %v576_v22  ;;  %v708_v22 = vld [vmem:[%s2023_s9 + $0x130] sm:$0xff] }
 0x1c7   :  { %1030 = vmatpush3.msra.mxu1 %v560_v23  ;;  %v707_v23 = vld [vmem:[%s2023_s9 + $0x128] sm:$0xff] }
 0x1c8   :  { %1031 = vmatprep.subr.mxu1 %v575_v24  ;;  %v706_v24 = vld [vmem:[%s2023_s9 + $0x120] sm:$0xff] }
 0x1c9   :  { %1032 = vmatpush3.msra.mxu1 %v559_v25  ;;  %v705_v25 = vld [vmem:[%s2023_s9 + $0x118] sm:$0xff]  ;;  %s872_s9 = sshll.u32 %s1261_s18, 4  ;;  %s873_s9 = int_to_ptr.vmem [resolvable:$true] %s872_s9 }
 0x1ca   :  { %1033 = vmatprep.subr.mxu1 %v574_v59  ;;  %p1242_p1 = scmp.lt.s32.totalorder %s873_s9, %s873_s9 }
 0x1cb   :  { %1034 = vmatpush3.msra.mxu1 %v558_v61 }
 0x1cc   :  { %1035 = vmatprep.subr.mxu1 %v573_v63 }
 0x1cd   :  { %1036 = vmatpush3.msra.mxu1 %v557_v2 }
 0x1ce   :  { %1037 = vmatprep.subr.mxu1 %v572_v4 }
 0x1cf   :  { %1038 = vmatpush3.msra.mxu1 %v556_v6 }
 0x1d0   :  { %1199 = vmatprep.subr.mxu1 %v1259_v1 }
 0x270   :  { %v453_v31 = vpop.f32.mrf.mxu1 }
 0x271   :  { %v1820_v32 = vadd.f32 %v453_v31, %v384_v30  ;;  %v884_v30 = vld [vmem:[%s2025_s11] ss:$0 sm:$0xff]  ;;  %s1237_s11 = scalar_lea.vmem %s873_s9, 128 }
 0x272   :  { %v1163_v34 = vpop.f32.mrf.mxu1  ;;  %p1238_p0 = scmp.ne.s32.totalorder %s873_s9, %s1237_s11  ;;  %p1243_p2 = scmp.lt.s32.totalorder %s1237_s11, %s1237_s11 }
 0x273   :  { %1197 = vmatmul.mubr.f32.vlgmr.msra.gmra.mxu0 %v1820_v32 }
 0x274   :  { %1043 = vmatpush3.msra.mxu0 %v685_v33  ;;  %p1244_p3 = por %p1243_p2, %p1242_p1 }
 0x275   :  { %1044 = vmatprep.subr.mxu0 %v700_v35 }
 0x276   :  { %1045 = vmatpush3.msra.mxu0 %v684_v36  ;;  %p1245_p4 = pnand %p1244_p3, %p1238_p0 }
 0x277   :  { %1046 = vmatprep.subr.mxu0 %v699_v37 }
 0x278   :  { %1047 = vmatpush3.msra.mxu0 %v683_v38 }
 0x279   :  { %1048 = vmatprep.subr.mxu0 %v698_v39 }
 0x27a   :  { %1049 = vmatpush3.msra.mxu0 %v682_v40 }
 0x27b   :  { %1050 = vmatprep.subr.mxu0 %v697_v41 }
 0x27c   :  { %1051 = vmatpush3.msra.mxu0 %v681_v42 }
 0x27d   :  { %1052 = vmatprep.subr.mxu0 %v696_v43 }
 0x27e   :  { %1053 = vmatpush3.msra.mxu0 %v680_v44 }
 0x27f   :  { %1054 = vmatprep.subr.mxu0 %v695_v45 }
 0x280   :  { %1055 = vmatpush3.msra.mxu0 %v679_v46 }
 0x281   :  { %1056 = vmatprep.subr.mxu0 %v694_v47 }
 0x282   :  { %1057 = vmatpush3.msra.mxu0 %v678_v48 }
 0x283   :  { %1058 = vmatprep.subr.mxu0 %v693_v49 }
 0x284   :  { %1059 = vmatpush3.msra.mxu0 %v677_v50 }
 0x285   :  { %1060 = vmatprep.subr.mxu0 %v692_v51 }
 0x286   :  { %1061 = vmatpush3.msra.mxu0 %v676_v52 }
 0x287   :  { %1062 = vmatprep.subr.mxu0 %v691_v53 }
 0x288   :  { %1063 = vmatpush3.msra.mxu0 %v675_v54 }
 0x289   :  { %1064 = vmatprep.subr.mxu0 %v690_v55 }
 0x28a   :  { %1065 = vmatpush3.msra.mxu0 %v674_v56 }
 0x28b   :  { %1066 = vmatprep.subr.mxu0 %v689_v57 }
 0x28c   :  { %1067 = vmatpush3.msra.mxu0 %v673_v58 }
 0x28d   :  { %1068 = vmatprep.subr.mxu0 %v688_v60 }
 0x28e   :  { %1069 = vmatpush3.msra.mxu0 %v672_v62 }
 0x28f   :  { %1070 = vmatprep.subr.mxu0 %v687_v0 }
 0x290   :  { %1071 = vmatpush3.msra.mxu0 %v671_v3 }
 0x291   :  { %1072 = vmatprep.subr.mxu0 %v686_v5 }
 0x292   :  { %1073 = vmatpush3.msra.mxu0 %v670_v7 }
 0x333   :  { %v548_v9 = vpop.f32.mrf.mxu0 }
 0x334   :  { %v549_v10 = vadd.f32 %v883_v8, %v548_v9 }
 0x335   :  { %v1198_v11 = vpop.f32.mrf.mxu0 }
 0x336   :  { %v552_v12 = vmax.f32 %v549_v10, 0.0 }
 0x338   :  { %659 = vmatprep.mubr.f32.mxu1 %v552_v12  ;;  %789 = vmatprep.mubr.f32.mxu0 %v552_v12 }
 0x339   :  { %660 = vmatmul.mubr.f32.vlgmr.msra.gmra.mxu1 %v1820_v32  ;;  %790 = vmatmul.mubr.f32.vlgmr.msra.gmra.mxu0 %v1820_v32 }
 0x33a   :  { %1200 = vmatpush3.msra.mxu1 %v717_v13  ;;  %1231 = vmatprep.mubr.msk.f32.mxu1 %vm1260_vm0, %v1259_v1 }
 0x33b   :  { %1201 = vmatprep.subr.mxu1 %v1259_v1 }
 0x33c   :  { %1202 = vmatpush3.msra.mxu1 %v716_v14 }
 0x33d   :  { %1203 = vmatprep.subr.mxu1 %v1259_v1 }
 0x33e   :  { %1204 = vmatpush3.msra.mxu1 %v715_v15 }
 0x33f   :  { %1205 = vmatprep.subr.mxu1 %v1259_v1 }
 0x340   :  { %1206 = vmatpush3.msra.mxu1 %v714_v16 }
 0x341   :  { %1207 = vmatprep.subr.mxu1 %v1259_v1 }
 0x342   :  { %1208 = vmatpush3.msra.mxu1 %v713_v17 }
 0x343   :  { %1209 = vmatprep.subr.mxu1 %v1259_v1 }
 0x344   :  { %1210 = vmatpush3.msra.mxu1 %v712_v18 }
 0x345   :  { %1211 = vmatprep.subr.mxu1 %v1259_v1 }
 0x346   :  { %1212 = vmatpush3.msra.mxu1 %v711_v19 }
 0x347   :  { %1213 = vmatprep.subr.mxu1 %v1259_v1 }
 0x348   :  { %1214 = vmatpush3.msra.mxu1 %v710_v20 }
 0x349   :  { %1215 = vmatprep.subr.mxu1 %v1259_v1 }
 0x34a   :  { %1216 = vmatpush3.msra.mxu1 %v709_v21 }
 0x34b   :  { %1217 = vmatprep.subr.mxu1 %v1259_v1 }
 0x34c   :  { %1218 = vmatpush3.msra.mxu1 %v708_v22 }
 0x34d   :  { %1219 = vmatprep.subr.mxu1 %v1259_v1 }
 0x34e   :  { %1220 = vmatpush3.msra.mxu1 %v707_v23 }
 0x34f   :  { %1221 = vmatprep.subr.mxu1 %v1259_v1 }
 0x350   :  { %1222 = vmatpush3.msra.mxu1 %v706_v24 }
 0x351   :  { %1223 = vmatprep.subr.mxu1 %v1259_v1 }
 0x352   :  { %1224 = vmatpush3.msra.mxu1 %v705_v25 }
 0x353   :  { %1225 = vmatprep.subr.mxu1 %v1259_v1 }
 0x354   :  { %1226 = vmatpush3.msra.mxu1 %v704_v26 }
 0x355   :  { %1227 = vmatprep.subr.mxu1 %v1259_v1 }
 0x356   :  { %1228 = vmatpush3.msra.mxu1 %v703_v27 }
 0x357   :  { %1229 = vmatprep.subr.mxu1 %v1259_v1  ;;  %v885_v1 = vld [vmem:[%s2026_s12] ss:$0 sm:$0xff] }
 0x358   :  { %1230 = vmatpush3.msra.mxu1 %v702_v28 }
 0x3f9   :  { %v1039_v29 = vpop.f32.mrf.mxu1  ;;  %v1074_v35 = vpop.f32.mrf.mxu0 }
 0x3fb   :  { %v1040_v31 = vpop.f32.mrf.mxu1  ;;  %v1075_v36 = vpop.f32.mrf.mxu0 }
 0x3fc   :  { %v1041_v32 = vadd.f32 %v1040_v31, %v1039_v29  ;;  %v1076_v37 = vadd.f32 %v1075_v36, %v1074_v35 }
 0x3fe   :  { %v662_v33 = vadd.f32 %v1041_v32, %v884_v30  ;;  %v792_v38 = vadd.f32 %v1076_v37, %v885_v1 }
 0x400   :  { %v665_v34 = vmax.f32 %v662_v33, 0.0 }
 0x402   :  { %1232 = vmatmul.mubr.f32.vlgmr.msra.gmra.mxu1 %v665_v34 }
 0x4c2   :  { %v861_v39 = vpop.f32.mrf.mxu1 }
 0x4c3   :  { %v862_v40 = vadd.f32 %v861_v39, %v792_v38 }
 0x4c4   :  { %v1233_v41 = vpop.f32.mrf.mxu1 }
 0x4c5   :  { %865 = vst [vmem:[#allocation3] sm:$0xff] %v862_v40 }
 0x4c6   :  { %1248 = shalt.err (!%p1245_p4)
}
 0x4c7   :  { %875 = dma.vmem_to_hbm [thread:$0]  %s873_s9, 128, %s2027_s13, [#allocation4]  }
 0x4c8   :  { %1257 = dma.done.wait [#allocation4], 128  }
 0x4c9   :  { %1258 = vsyncadd [#allocation4], 4294967168 }
 0x4ca   :  { %879 = vsyncpa [#allocation4], 1 }

</bundles_post_ra>
